<compile_context>
chip_gen: v6e
topology: v6e:2x2x1
jax: 0.10.0
libtpu: 0.0.40
codegen_flags: <defaults>
</compile_context>

<pallas_src>
import functools
import math

import jax
import jax.numpy as jnp
from jax.experimental import pallas as pl
from jax.experimental.pallas import tpu as pltpu


def _mol2graph_kernel(pos_row_ref, valid_row_ref, pos_cm_ref, valid_all_ref,
                      rep3_ref, sel3_ref, colf_ref, off_ref,
                      adj_ref, ndiff_ref, ef_ref,
                      *, cutoff, rbf_coeff, eps):
    """One grid step = TB molecules x NT query atoms (rows) x all neighbours.

    Block shapes (f32):
      pos_row_ref   (TB, NT, 3)    query-atom positions (original layout)
      valid_row_ref (TB, NT, 1)    1.0 where atomic_number != 0
      pos_cm_ref    (TB, 3, N)     all-atom positions, coordinate-major
      valid_all_ref (TB, 1, N)     validity of all atoms
      rep3_ref      (TB, 3, 3N)    neighbour coords repeated 3x: [c, 3j+c'] = pos[j, c]
      sel3_ref      (1, 3, 3N)     coord-select masks  sel[c, l] = (l % 3 == c)
      colf_ref      (TB, 4, N*F)   rows 0..2: neighbour coords repeated Fx,
                                   row 3: neighbour validity repeated Fx
      off_ref       (1, 1, N*F)    RBF centers tiled Nx: [j*F+f] = off[f]
      adj_ref       (TB, NT, N)     out: adjacency
      ndiff_ref     (TB, NT, 3N)    out: normalized differences, (j, coord) flat
      ef_ref        (TB, NT, N*F)   out: adj * RBF edge features, (j, f) flat
    """
    pi_over_cutoff = math.pi / cutoff

    # Query-atom (row) quantities: (TB, NT, 1); broadcast along lanes for free.
    pix = pos_row_ref[:, :, 0:1]
    piy = pos_row_ref[:, :, 1:2]
    piz = pos_row_ref[:, :, 2:3]
    vi = valid_row_ref[...]

    # ---- adjacency: one lane per neighbour atom -----------------------------
    dx = pix - pos_cm_ref[:, 0:1, :]
    dy = piy - pos_cm_ref[:, 1:2, :]
    dz = piz - pos_cm_ref[:, 2:3, :]
    d = jnp.sqrt(dx * dx + dy * dy + dz * dz)             # (TB, NT, N); diag -> 0
    adj = 0.5 * (jnp.cos(d * pi_over_cutoff) + 1.0)
    adj = adj * (d < cutoff).astype(jnp.float32) * (vi * valid_all_ref[...])
    adj_ref[...] = adj

    # ---- normalized differences: (neighbour, coord) flattened into lanes ----
    dx3 = pix - rep3_ref[:, 0:1, :]
    dy3 = piy - rep3_ref[:, 1:2, :]
    dz3 = piz - rep3_ref[:, 2:3, :]
    d3 = jnp.sqrt(dx3 * dx3 + dy3 * dy3 + dz3 * dz3)       # (TB, NT, 3N)
    diff3 = (sel3_ref[:, 0:1, :] * dx3 + sel3_ref[:, 1:2, :] * dy3 +
             sel3_ref[:, 2:3, :] * dz3)                    # each lane's own coord
    ndiff_ref[...] = diff3 / (d3 + eps)                    # diag: 0 / eps == 0

    # ---- RBF edge features fused with EfDecay: (neighbour, rbf) in lanes ----
    dxf = pix - colf_ref[:, 0:1, :]
    dyf = piy - colf_ref[:, 1:2, :]
    dzf = piz - colf_ref[:, 2:3, :]
    df = jnp.sqrt(dxf * dxf + dyf * dyf + dzf * dzf)       # (TB, NT, N*F)
    adjf = 0.5 * (jnp.cos(df * pi_over_cutoff) + 1.0)
    adjf = adjf * (df < cutoff).astype(jnp.float32) * (vi * colf_ref[:, 3:4, :])
    t = df - off_ref[...]
    ef_ref[...] = (adjf * jnp.exp(rbf_coeff * (t * t))).astype(ef_ref.dtype)


def _est_vmem_bytes(tb, nt, n, f):
    """Per-step VMEM estimate INCLUDING in-kernel temporaries (review item)."""
    lf = n * f
    l3 = 3 * n
    out = 2 * tb * nt * (n + l3 + lf) * 4                      # double-buffered outs
    inp = 2 * 4 * (tb * nt * 4                                 # pos_row + valid_row
                   + tb * 4 * n                                # pos_cm + valid_all
                   + (tb + 1) * 3 * l3                         # rep3 + sel3
                   + (tb * 4 + 1) * lf)                        # colf + offf
    # live in-kernel slabs (not double-buffered): ~5 (NT, N*F), ~5 (NT, 3N),
    # ~4 (NT, N) per molecule in the batch.
    tmp = 4 * tb * nt * (5 * lf + 5 * l3 + 4 * n)
    return out + inp + tmp


def _vmem_budget():
    """(per-step working-set budget, scoped-VMEM limit) — generation aware
    (v5e/v6e: 128 MiB physical VMEM, v7x: 64 MiB)."""
    try:
        phys = int(pltpu.get_tpu_info().vmem_capacity_bytes)
    except Exception:
        phys = 64 * 1024 * 1024                                # conservative (v7x)
    limit = min((phys * 3) // 4, 96 * 1024 * 1024)
    return (limit * 3) // 4, limit


def _choose_tiles(batch, n, f, budget):
    """(TB molecules, NT query rows) per grid step: biggest blocks that fit the
    VMEM budget while keeping >= 4 grid steps when possible (>= 2 per v7x TC)."""
    nt_opts = sorted({d for d in range(8, n + 1, 8) if n % d == 0} | {n},
                     reverse=True)
    tb_opts = sorted((d for d in range(1, batch + 1) if batch % d == 0),
                     reverse=True)
    for want_steps in (4, 2, 1):
        for nt in nt_opts:
            for tb in tb_opts:
                if (batch // tb) * (n // nt) < want_steps:
                    continue
                if _est_vmem_bytes(tb, nt, n, f) <= budget:
                    return tb, nt
    return 1, nt_opts[-1]


def mol2graph(atomic_numbers, atomic_positions, emb_table, rbf_offsets, *,
              cutoff, ef_dtype=jnp.float32):
    B, N = atomic_numbers.shape
    F = int(rbf_offsets.shape[-1])
    delta = float(cutoff) / (F - 1) if F > 1 else float(cutoff)
    rbf_coeff = -0.5 / (delta * delta)

    # Embedding lookup as a plain XLA gather (exact nn.Embedding(padding_idx=0)
    # semantics: table row 0 is zero).  ln_emb=False -> Identity.
    emb = emb_table[atomic_numbers]                              # (B, N, H)

    pos = atomic_positions.astype(jnp.float32)                    # (B, N, 3)
    pos_cm = jnp.transpose(pos, (0, 2, 1))                        # (B, 3, N)
    valid = (atomic_numbers != 0).astype(jnp.float32)             # (B, N)

    # Per-neighbour lane constants (O(B*N*F) bytes — a factor N smaller than the
    # outputs) so the kernel never has to repeat per-pair data across lanes.
    rep3 = jnp.repeat(pos_cm, 3, axis=2)                          # (B, 3, 3N)
    sel3 = (jnp.arange(3 * N) % 3 ==
            jnp.arange(3)[:, None]).astype(jnp.float32)[None]     # (1, 3, 3N)
    colf = jnp.repeat(jnp.concatenate([pos_cm, valid[:, None, :]], axis=1),
                      F, axis=2)                                  # (B, 4, N*F)
    offf = jnp.tile(rbf_offsets.astype(jnp.float32).reshape(F),
                    (N,))[None, None, :]                          # (1, 1, N*F)
    valid_row = valid[:, :, None]                                 # (B, N, 1)
    valid_all = valid[:, None, :]                                 # (B, 1, N)

    budget, vmem_limit = _vmem_budget()
    TB, NT = _choose_tiles(B, N, F, budget)
    grid = (B // TB, N // NT)

    kernel = functools.partial(_mol2graph_kernel, cutoff=float(cutoff),
                               rbf_coeff=rbf_coeff, eps=1e-6)

    out_shapes = (
        jax.ShapeDtypeStruct((B, N, N), jnp.float32),             # adjacency
        jax.ShapeDtypeStruct((B, N, 3 * N), jnp.float32),         # ndiff, (j, c) flat
        jax.ShapeDtypeStruct((B, N, N * F), ef_dtype),            # ef,    (j, f) flat
    )

    grid_spec = pltpu.PrefetchScalarGridSpec(
        num_scalar_prefetch=0,
        grid=grid,
        in_specs=[
            pl.BlockSpec((TB, NT, 3), lambda b, r: (b, r, 0)),        # pos_row
            pl.BlockSpec((TB, NT, 1), lambda b, r: (b, r, 0)),        # valid_row
            pl.BlockSpec((TB, 3, N), lambda b, r: (b, 0, 0)),         # pos_cm
            pl.BlockSpec((TB, 1, N), lambda b, r: (b, 0, 0)),         # valid_all
            pl.BlockSpec((TB, 3, 3 * N), lambda b, r: (b, 0, 0)),     # rep3
            pl.BlockSpec((1, 3, 3 * N), lambda b, r: (0, 0, 0)),      # sel3
            pl.BlockSpec((TB, 4, N * F), lambda b, r: (b, 0, 0)),     # colf
            pl.BlockSpec((1, 1, N * F), lambda b, r: (0, 0, 0)),      # offf
        ],
        out_specs=[
            pl.BlockSpec((TB, NT, N), lambda b, r: (b, r, 0)),
            pl.BlockSpec((TB, NT, 3 * N), lambda b, r: (b, r, 0)),
            pl.BlockSpec((TB, NT, N * F), lambda b, r: (b, r, 0)),
        ],
    )

    n_pairs = B * N * N
    cost = pl.CostEstimate(
        flops=n_pairs * (16 * F + 60),
        transcendentals=n_pairs * (3 * F + 11),
        bytes_accessed=4 * (n_pairs * (1 + 3 + F)
                            + B * N * (3 + 1 + 3 + 1 + 9 + 4 * F)
                            + 9 * N + N * F),
    )

    adj, ndiff_flat, ef_flat = pl.pallas_call(
        kernel,
        out_shape=out_shapes,
        grid_spec=grid_spec,
        compiler_params=pltpu.CompilerParams(
            dimension_semantics=("parallel", "parallel"),
            vmem_limit_bytes=vmem_limit),
        cost_estimate=cost,
    )(pos, valid_row, pos_cm, valid_all, rep3, sel3, colf, offf)

    # Free, layout-preserving reshapes back to the PyTorch output convention
    # (only the minor dimension is split — no data movement, no transpose).
    ndiff = ndiff_flat.reshape(B, N, N, 3)
    ef = ef_flat.reshape(B, N, N, F)
    return emb, adj, ndiff, ef


def _reference(z, pos, table, offs, cutoff):
    """Pure-JAX replica of the PyTorch forward (same config choices)."""
    eps = 1e-6
    B, N = z.shape
    F = offs.shape[-1]
    emb = table[z]                                               # (B, N, H)
    diff = pos[:, :, None, :] - pos[:, None, :, :]               # (B, N, N, 3)
    eye = jnp.eye(N, dtype=bool)
    diff = jnp.where(eye[None, :, :, None], 1.0, diff)
    dist = jnp.linalg.norm(diff, axis=-1)
    ndiff = diff / (dist[..., None] + eps)
    dist = jnp.where(eye[None], 0.0, dist)
    ndiff = jnp.where(eye[None, :, :, None], 0.0, ndiff)
    delta = cutoff / (F - 1)
    coeff = -0.5 / (delta * delta)
    ef = jnp.exp(coeff * (dist[..., None] - offs.reshape(1, 1, 1, F)) ** 2)
    adj = 0.5 * (jnp.cos(dist * jnp.pi / cutoff) + 1.0)
    adj = adj * (dist < cutoff).astype(jnp.float32)
    zm = z == 0
    pm = zm[:, :, None] | zm[:, None, :]
    adj = jnp.where(pm, 0.0, adj)
    ef = adj[..., None] * ef
    return emb, adj, ndiff, ef


if __name__ == "__main__":
    # Small, deterministic problem: batch=4, atoms=8, hid_dim=32, ef_dim=16.
    # (B=4, N=8 gives a 4-step, 2-axis parallel grid; N*F = 128 -> lane-dense.)
    B, N, H, F = 4, 8, 32, 16
    MAX_Z = 9
    CUTOFF = 5.0

    key = jax.random.PRNGKey(0)
    kz, kp, kt = jax.random.split(key, 3)

    atomic_numbers = jax.random.randint(kz, (B, N), 0, MAX_Z + 1,
                                        dtype=jnp.int32)
    # force some padding atoms to exercise the z==0 mask
    atomic_numbers = atomic_numbers.at[:, -2:].set(0)
    atomic_positions = 2.0 * jax.random.normal(kp, (B, N, 3), jnp.float32)

    # Embedding table, padding_idx=0 -> row 0 zeroed.
    emb_table = 0.1 * jax.random.normal(kt, (MAX_Z + 1, H), jnp.float32)
    emb_table = emb_table.at[0].set(0.0)

    rbf_offsets = jnp.linspace(0.0, CUTOFF, F, dtype=jnp.float32)

    outs = mol2graph(atomic_numbers, atomic_positions, emb_table, rbf_offsets,
                     cutoff=CUTOFF)
    outs = jax.block_until_ready(outs)

    refs = _reference(atomic_numbers, atomic_positions, emb_table, rbf_offsets,
                      CUTOFF)
    for o, r in zip(outs, refs):
        assert o.shape == r.shape and o.dtype == r.dtype
        assert jnp.allclose(o, r, atol=1e-5, rtol=1e-5)

    print("KERNEL_OK")
</pallas_src>

<mosaic_0001>
module attributes {stable_mosaic.version = 11 : i64} {
  func.func @_mol2graph_kernel(%arg0: i32, %arg1: i32, %arg2: memref<1x8x3xf32, #tpu.memory_space<vmem>>, %arg3: memref<1x8x1xf32, #tpu.memory_space<vmem>>, %arg4: memref<1x3x8xf32, #tpu.memory_space<vmem>>, %arg5: memref<1x1x8xf32, #tpu.memory_space<vmem>>, %arg6: memref<1x3x24xf32, #tpu.memory_space<vmem>>, %arg7: memref<1x3x24xf32, #tpu.memory_space<vmem>>, %arg8: memref<1x4x128xf32, #tpu.memory_space<vmem>>, %arg9: memref<1x1x128xf32, #tpu.memory_space<vmem>>, %arg10: memref<1x8x8xf32, #tpu.memory_space<vmem>>, %arg11: memref<1x8x24xf32, #tpu.memory_space<vmem>>, %arg12: memref<1x8x128xf32, #tpu.memory_space<vmem>>) attributes {dimension_semantics = [#tpu.dimension_semantics<parallel>, #tpu.dimension_semantics<parallel>], iteration_bounds = array<i64: 4, 1>, scalar_prefetch = 0 : i64, scratch_operands = 0 : i64, tpu.core_type = #tpu.core_type<tc>, window_params = [{transform_indices = @transform_0, window_bounds = array<i64: 1, 8, 3>}, {transform_indices = @transform_1, window_bounds = array<i64: 1, 8, 1>}, {transform_indices = @transform_2, window_bounds = array<i64: 1, 3, 8>}, {transform_indices = @transform_3, window_bounds = array<i64: 1, 1, 8>}, {transform_indices = @transform_4, window_bounds = array<i64: 1, 3, 24>}, {pipeline_mode = #tpu.pipeline_mode<synchronous>, transform_indices = @transform_5, window_bounds = array<i64: 1, 3, 24>}, {transform_indices = @transform_6, window_bounds = array<i64: 1, 4, 128>}, {pipeline_mode = #tpu.pipeline_mode<synchronous>, transform_indices = @transform_7, window_bounds = array<i64: 1, 1, 128>}, {transform_indices = @transform_8, window_bounds = array<i64: 1, 8, 8>}, {transform_indices = @transform_9, window_bounds = array<i64: 1, 8, 24>}, {transform_indices = @transform_10, window_bounds = array<i64: 1, 8, 128>}]} {
    %c0 = arith.constant 0 : index
    %c0_0 = arith.constant 0 : index
    %c0_1 = arith.constant 0 : index
    %0 = vector.load %arg2[%c0, %c0_0, %c0_1] : memref<1x8x3xf32, #tpu.memory_space<vmem>>, vector<1x8x1xf32>
    %c0_2 = arith.constant 0 : index
    %c0_3 = arith.constant 0 : index
    %c1 = arith.constant 1 : index
    %1 = vector.load %arg2[%c0_2, %c0_3, %c1] : memref<1x8x3xf32, #tpu.memory_space<vmem>>, vector<1x8x1xf32>
    %c0_4 = arith.constant 0 : index
    %c0_5 = arith.constant 0 : index
    %c2 = arith.constant 2 : index
    %2 = vector.load %arg2[%c0_4, %c0_5, %c2] : memref<1x8x3xf32, #tpu.memory_space<vmem>>, vector<1x8x1xf32>
    %c0_6 = arith.constant 0 : index
    %c0_7 = arith.constant 0 : index
    %c0_8 = arith.constant 0 : index
    %3 = vector.load %arg3[%c0_6, %c0_7, %c0_8] : memref<1x8x1xf32, #tpu.memory_space<vmem>>, vector<1x8x1xf32>
    %c0_9 = arith.constant 0 : index
    %c0_10 = arith.constant 0 : index
    %c0_11 = arith.constant 0 : index
    %4 = vector.load %arg4[%c0_9, %c0_10, %c0_11] : memref<1x3x8xf32, #tpu.memory_space<vmem>>, vector<1x1x8xf32>
    %5 = vector.broadcast %0 : vector<1x8x1xf32> to vector<1x8x8xf32>
    %6 = vector.broadcast %4 : vector<1x1x8xf32> to vector<1x8x8xf32>
    %7 = arith.subf %5, %6 : vector<1x8x8xf32>
    %c0_12 = arith.constant 0 : index
    %c1_13 = arith.constant 1 : index
    %c0_14 = arith.constant 0 : index
    %8 = vector.load %arg4[%c0_12, %c1_13, %c0_14] : memref<1x3x8xf32, #tpu.memory_space<vmem>>, vector<1x1x8xf32>
    %9 = vector.broadcast %1 : vector<1x8x1xf32> to vector<1x8x8xf32>
    %10 = vector.broadcast %8 : vector<1x1x8xf32> to vector<1x8x8xf32>
    %11 = arith.subf %9, %10 : vector<1x8x8xf32>
    %c0_15 = arith.constant 0 : index
    %c2_16 = arith.constant 2 : index
    %c0_17 = arith.constant 0 : index
    %12 = vector.load %arg4[%c0_15, %c2_16, %c0_17] : memref<1x3x8xf32, #tpu.memory_space<vmem>>, vector<1x1x8xf32>
    %13 = vector.broadcast %2 : vector<1x8x1xf32> to vector<1x8x8xf32>
    %14 = vector.broadcast %12 : vector<1x1x8xf32> to vector<1x8x8xf32>
    %15 = arith.subf %13, %14 : vector<1x8x8xf32>
    %16 = arith.mulf %7, %7 : vector<1x8x8xf32>
    %17 = arith.mulf %11, %11 : vector<1x8x8xf32>
    %18 = arith.addf %16, %17 : vector<1x8x8xf32>
    %19 = arith.mulf %15, %15 : vector<1x8x8xf32>
    %20 = arith.addf %18, %19 : vector<1x8x8xf32>
    %21 = math.sqrt %20 : vector<1x8x8xf32>
    %cst = arith.constant 0.628318548 : f32
    %22 = vector.broadcast %cst : f32 to vector<1x8x8xf32>
    %23 = arith.mulf %21, %22 : vector<1x8x8xf32>
    %24 = math.cos %23 : vector<1x8x8xf32>
    %cst_18 = arith.constant 1.000000e+00 : f32
    %25 = vector.broadcast %cst_18 : f32 to vector<1x8x8xf32>
    %26 = arith.addf %24, %25 : vector<1x8x8xf32>
    %cst_19 = arith.constant 5.000000e-01 : f32
    %27 = vector.broadcast %cst_19 : f32 to vector<1x8x8xf32>
    %28 = arith.mulf %27, %26 : vector<1x8x8xf32>
    %cst_20 = arith.constant 5.000000e+00 : f32
    %29 = vector.broadcast %cst_20 : f32 to vector<1x8x8xf32>
    %30 = arith.cmpf olt, %21, %29 : vector<1x8x8xf32>
    %31 = arith.extui %30 : vector<1x8x8xi1> to vector<1x8x8xi32>
    %32 = arith.sitofp %31 : vector<1x8x8xi32> to vector<1x8x8xf32>
    %33 = arith.mulf %28, %32 : vector<1x8x8xf32>
    %c0_21 = arith.constant 0 : index
    %c0_22 = arith.constant 0 : index
    %c0_23 = arith.constant 0 : index
    %34 = vector.load %arg5[%c0_21, %c0_22, %c0_23] : memref<1x1x8xf32, #tpu.memory_space<vmem>>, vector<1x1x8xf32>
    %35 = vector.broadcast %3 : vector<1x8x1xf32> to vector<1x8x8xf32>
    %36 = vector.broadcast %34 : vector<1x1x8xf32> to vector<1x8x8xf32>
    %37 = arith.mulf %35, %36 : vector<1x8x8xf32>
    %38 = arith.mulf %33, %37 : vector<1x8x8xf32>
    %c0_24 = arith.constant 0 : index
    %c0_25 = arith.constant 0 : index
    %c0_26 = arith.constant 0 : index
    %39 = vector.load %arg10[%c0_24, %c0_25, %c0_26] : memref<1x8x8xf32, #tpu.memory_space<vmem>>, vector<1x8x8xf32>
    tpu.vector_store %arg10[%c0_24, %c0_25, %c0_26], %38 {strides = array<i32>} : memref<1x8x8xf32, #tpu.memory_space<vmem>>, vector<1x8x8xf32>,
    %c0_27 = arith.constant 0 : index
    %c0_28 = arith.constant 0 : index
    %c0_29 = arith.constant 0 : index
    %40 = vector.load %arg6[%c0_27, %c0_28, %c0_29] : memref<1x3x24xf32, #tpu.memory_space<vmem>>, vector<1x1x24xf32>
    %41 = vector.broadcast %0 : vector<1x8x1xf32> to vector<1x8x24xf32>
    %42 = vector.broadcast %40 : vector<1x1x24xf32> to vector<1x8x24xf32>
    %43 = arith.subf %41, %42 : vector<1x8x24xf32>
    %c0_30 = arith.constant 0 : index
    %c1_31 = arith.constant 1 : index
    %c0_32 = arith.constant 0 : index
    %44 = vector.load %arg6[%c0_30, %c1_31, %c0_32] : memref<1x3x24xf32, #tpu.memory_space<vmem>>, vector<1x1x24xf32>
    %45 = vector.broadcast %1 : vector<1x8x1xf32> to vector<1x8x24xf32>
    %46 = vector.broadcast %44 : vector<1x1x24xf32> to vector<1x8x24xf32>
    %47 = arith.subf %45, %46 : vector<1x8x24xf32>
    %c0_33 = arith.constant 0 : index
    %c2_34 = arith.constant 2 : index
    %c0_35 = arith.constant 0 : index
    %48 = vector.load %arg6[%c0_33, %c2_34, %c0_35] : memref<1x3x24xf32, #tpu.memory_space<vmem>>, vector<1x1x24xf32>
    %49 = vector.broadcast %2 : vector<1x8x1xf32> to vector<1x8x24xf32>
    %50 = vector.broadcast %48 : vector<1x1x24xf32> to vector<1x8x24xf32>
    %51 = arith.subf %49, %50 : vector<1x8x24xf32>
    %52 = arith.mulf %43, %43 : vector<1x8x24xf32>
    %53 = arith.mulf %47, %47 : vector<1x8x24xf32>
    %54 = arith.addf %52, %53 : vector<1x8x24xf32>
    %55 = arith.mulf %51, %51 : vector<1x8x24xf32>
    %56 = arith.addf %54, %55 : vector<1x8x24xf32>
    %57 = math.sqrt %56 : vector<1x8x24xf32>
    %c0_36 = arith.constant 0 : index
    %c0_37 = arith.constant 0 : index
    %c0_38 = arith.constant 0 : index
    %58 = vector.load %arg7[%c0_36, %c0_37, %c0_38] : memref<1x3x24xf32, #tpu.memory_space<vmem>>, vector<1x1x24xf32>
    %59 = vector.broadcast %58 : vector<1x1x24xf32> to vector<1x8x24xf32>
    %60 = arith.mulf %59, %43 : vector<1x8x24xf32>
    %c0_39 = arith.constant 0 : index
    %c1_40 = arith.constant 1 : index
    %c0_41 = arith.constant 0 : index
    %61 = vector.load %arg7[%c0_39, %c1_40, %c0_41] : memref<1x3x24xf32, #tpu.memory_space<vmem>>, vector<1x1x24xf32>
    %62 = vector.broadcast %61 : vector<1x1x24xf32> to vector<1x8x24xf32>
    %63 = arith.mulf %62, %47 : vector<1x8x24xf32>
    %64 = arith.addf %60, %63 : vector<1x8x24xf32>
    %c0_42 = arith.constant 0 : index
    %c2_43 = arith.constant 2 : index
    %c0_44 = arith.constant 0 : index
    %65 = vector.load %arg7[%c0_42, %c2_43, %c0_44] : memref<1x3x24xf32, #tpu.memory_space<vmem>>, vector<1x1x24xf32>
    %66 = vector.broadcast %65 : vector<1x1x24xf32> to vector<1x8x24xf32>
    %67 = arith.mulf %66, %51 : vector<1x8x24xf32>
    %68 = arith.addf %64, %67 : vector<1x8x24xf32>
    %cst_45 = arith.constant 9.99999997E-7 : f32
    %69 = vector.broadcast %cst_45 : f32 to vector<1x8x24xf32>
    %70 = arith.addf %57, %69 : vector<1x8x24xf32>
    %71 = arith.divf %68, %70 : vector<1x8x24xf32>
    %c0_46 = arith.constant 0 : index
    %c0_47 = arith.constant 0 : index
    %c0_48 = arith.constant 0 : index
    %72 = vector.load %arg11[%c0_46, %c0_47, %c0_48] : memref<1x8x24xf32, #tpu.memory_space<vmem>>, vector<1x8x24xf32>
    tpu.vector_store %arg11[%c0_46, %c0_47, %c0_48], %71 {strides = array<i32>} : memref<1x8x24xf32, #tpu.memory_space<vmem>>, vector<1x8x24xf32>,
    %c0_49 = arith.constant 0 : index
    %c0_50 = arith.constant 0 : index
    %c0_51 = arith.constant 0 : index
    %73 = vector.load %arg8[%c0_49, %c0_50, %c0_51] : memref<1x4x128xf32, #tpu.memory_space<vmem>>, vector<1x1x128xf32>
    %74 = vector.broadcast %0 : vector<1x8x1xf32> to vector<1x8x128xf32>
    %75 = vector.broadcast %73 : vector<1x1x128xf32> to vector<1x8x128xf32>
    %76 = arith.subf %74, %75 : vector<1x8x128xf32>
    %c0_52 = arith.constant 0 : index
    %c1_53 = arith.constant 1 : index
    %c0_54 = arith.constant 0 : index
    %77 = vector.load %arg8[%c0_52, %c1_53, %c0_54] : memref<1x4x128xf32, #tpu.memory_space<vmem>>, vector<1x1x128xf32>
    %78 = vector.broadcast %1 : vector<1x8x1xf32> to vector<1x8x128xf32>
    %79 = vector.broadcast %77 : vector<1x1x128xf32> to vector<1x8x128xf32>
    %80 = arith.subf %78, %79 : vector<1x8x128xf32>
    %c0_55 = arith.constant 0 : index
    %c2_56 = arith.constant 2 : index
    %c0_57 = arith.constant 0 : index
    %81 = vector.load %arg8[%c0_55, %c2_56, %c0_57] : memref<1x4x128xf32, #tpu.memory_space<vmem>>, vector<1x1x128xf32>
    %82 = vector.broadcast %2 : vector<1x8x1xf32> to vector<1x8x128xf32>
    %83 = vector.broadcast %81 : vector<1x1x128xf32> to vector<1x8x128xf32>
    %84 = arith.subf %82, %83 : vector<1x8x128xf32>
    %85 = arith.mulf %76, %76 : vector<1x8x128xf32>
    %86 = arith.mulf %80, %80 : vector<1x8x128xf32>
    %87 = arith.addf %85, %86 : vector<1x8x128xf32>
    %88 = arith.mulf %84, %84 : vector<1x8x128xf32>
    %89 = arith.addf %87, %88 : vector<1x8x128xf32>
    %90 = math.sqrt %89 : vector<1x8x128xf32>
    %cst_58 = arith.constant 0.628318548 : f32
    %91 = vector.broadcast %cst_58 : f32 to vector<1x8x128xf32>
    %92 = arith.mulf %90, %91 : vector<1x8x128xf32>
    %93 = math.cos %92 : vector<1x8x128xf32>
    %cst_59 = arith.constant 1.000000e+00 : f32
    %94 = vector.broadcast %cst_59 : f32 to vector<1x8x128xf32>
    %95 = arith.addf %93, %94 : vector<1x8x128xf32>
    %cst_60 = arith.constant 5.000000e-01 : f32
    %96 = vector.broadcast %cst_60 : f32 to vector<1x8x128xf32>
    %97 = arith.mulf %96, %95 : vector<1x8x128xf32>
    %cst_61 = arith.constant 5.000000e+00 : f32
    %98 = vector.broadcast %cst_61 : f32 to vector<1x8x128xf32>
    %99 = arith.cmpf olt, %90, %98 : vector<1x8x128xf32>
    %100 = arith.extui %99 : vector<1x8x128xi1> to vector<1x8x128xi32>
    %101 = arith.sitofp %100 : vector<1x8x128xi32> to vector<1x8x128xf32>
    %102 = arith.mulf %97, %101 : vector<1x8x128xf32>
    %c0_62 = arith.constant 0 : index
    %c3 = arith.constant 3 : index
    %c0_63 = arith.constant 0 : index
    %103 = vector.load %arg8[%c0_62, %c3, %c0_63] : memref<1x4x128xf32, #tpu.memory_space<vmem>>, vector<1x1x128xf32>
    %104 = vector.broadcast %3 : vector<1x8x1xf32> to vector<1x8x128xf32>
    %105 = vector.broadcast %103 : vector<1x1x128xf32> to vector<1x8x128xf32>
    %106 = arith.mulf %104, %105 : vector<1x8x128xf32>
    %107 = arith.mulf %102, %106 : vector<1x8x128xf32>
    %c0_64 = arith.constant 0 : index
    %c0_65 = arith.constant 0 : index
    %c0_66 = arith.constant 0 : index
    %108 = vector.load %arg9[%c0_64, %c0_65, %c0_66] : memref<1x1x128xf32, #tpu.memory_space<vmem>>, vector<1x1x128xf32>
    %109 = vector.broadcast %108 : vector<1x1x128xf32> to vector<1x8x128xf32>
    %110 = arith.subf %90, %109 : vector<1x8x128xf32>
    %111 = arith.mulf %110, %110 : vector<1x8x128xf32>
    %cst_67 = arith.constant -4.500000e+00 : f32
    %112 = vector.broadcast %cst_67 : f32 to vector<1x8x128xf32>
    %113 = arith.mulf %112, %111 : vector<1x8x128xf32>
    %114 = math.exp %113 : vector<1x8x128xf32>
    %115 = arith.mulf %107, %114 : vector<1x8x128xf32>
    %c0_68 = arith.constant 0 : index
    %c0_69 = arith.constant 0 : index
    %c0_70 = arith.constant 0 : index
    %116 = vector.load %arg12[%c0_68, %c0_69, %c0_70] : memref<1x8x128xf32, #tpu.memory_space<vmem>>, vector<1x8x128xf32>
    tpu.vector_store %arg12[%c0_68, %c0_69, %c0_70], %115 {strides = array<i32>} : memref<1x8x128xf32, #tpu.memory_space<vmem>>, vector<1x8x128xf32>,
    return
  }
  func.func @transform_0(%arg0: i32, %arg1: i32) -> (i32, i32, i32) {
    %c0_i32 = arith.constant 0 : i32
    %c0_i32_0 = arith.constant 0 : i32
    return %arg0, %arg1, %c0_i32 : i32, i32, i32
  }
  func.func @transform_1(%arg0: i32, %arg1: i32) -> (i32, i32, i32) {
    %c0_i32 = arith.constant 0 : i32
    %c0_i32_0 = arith.constant 0 : i32
    return %arg0, %arg1, %c0_i32 : i32, i32, i32
  }
  func.func @transform_2(%arg0: i32, %arg1: i32) -> (i32, i32, i32) {
    %c0_i32 = arith.constant 0 : i32
    %c0_i32_0 = arith.constant 0 : i32
    %c0_i32_1 = arith.constant 0 : i32
    return %arg0, %c0_i32, %c0_i32_0 : i32, i32, i32
  }
  func.func @transform_3(%arg0: i32, %arg1: i32) -> (i32, i32, i32) {
    %c0_i32 = arith.constant 0 : i32
    %c0_i32_0 = arith.constant 0 : i32
    %c0_i32_1 = arith.constant 0 : i32
    return %arg0, %c0_i32, %c0_i32_0 : i32, i32, i32
  }
  func.func @transform_4(%arg0: i32, %arg1: i32) -> (i32, i32, i32) {
    %c0_i32 = arith.constant 0 : i32
    %c0_i32_0 = arith.constant 0 : i32
    %c0_i32_1 = arith.constant 0 : i32
    return %arg0, %c0_i32, %c0_i32_0 : i32, i32, i32
  }
  func.func @transform_5(%arg0: i32, %arg1: i32) -> (i32, i32, i32) {
    %c0_i32 = arith.constant 0 : i32
    %c0_i32_0 = arith.constant 0 : i32
    %c0_i32_1 = arith.constant 0 : i32
    %c0_i32_2 = arith.constant 0 : i32
    return %c0_i32, %c0_i32_0, %c0_i32_1 : i32, i32, i32
  }
  func.func @transform_6(%arg0: i32, %arg1: i32) -> (i32, i32, i32) {
    %c0_i32 = arith.constant 0 : i32
    %c0_i32_0 = arith.constant 0 : i32
    %c0_i32_1 = arith.constant 0 : i32
    return %arg0, %c0_i32, %c0_i32_0 : i32, i32, i32
  }
  func.func @transform_7(%arg0: i32, %arg1: i32) -> (i32, i32, i32) {
    %c0_i32 = arith.constant 0 : i32
    %c0_i32_0 = arith.constant 0 : i32
    %c0_i32_1 = arith.constant 0 : i32
    %c0_i32_2 = arith.constant 0 : i32
    return %c0_i32, %c0_i32_0, %c0_i32_1 : i32, i32, i32
  }
  func.func @transform_8(%arg0: i32, %arg1: i32) -> (i32, i32, i32) {
    %c0_i32 = arith.constant 0 : i32
    %c0_i32_0 = arith.constant 0 : i32
    return %arg0, %arg1, %c0_i32 : i32, i32, i32
  }
  func.func @transform_9(%arg0: i32, %arg1: i32) -> (i32, i32, i32) {
    %c0_i32 = arith.constant 0 : i32
    %c0_i32_0 = arith.constant 0 : i32
    return %arg0, %arg1, %c0_i32 : i32, i32, i32
  }
  func.func @transform_10(%arg0: i32, %arg1: i32) -> (i32, i32, i32) {
    %c0_i32 = arith.constant 0 : i32
    %c0_i32_0 = arith.constant 0 : i32
    return %arg0, %arg1, %c0_i32 : i32, i32, i32
  }
}

</mosaic_0001>

<bundles_post_ra>
// kernel: tpu_custom_call.1
= control target key start
LH: loop header
LB: loop body
LE: loop exit
PB: predicated region body
PF: predicated region fallthrough
CT: control target
= control target key end

     0   :  { %s1838_s0 = inlined_call_operand.vmem [shape: f32[4,8,3], index: 0, kind: input, shape index: {}]   ;;  %s1839_s1 = inlined_call_operand.vmem [shape: f32[4,8,1], index: 1, kind: input, shape index: {}]   ;;  %s1840_s2 = inlined_call_operand.vmem [shape: f32[4,3,8], index: 2, kind: input, shape index: {}]   ;;  %s1841_s3 = inlined_call_operand.vmem [shape: f32[4,1,8], index: 3, kind: input, shape index: {}]   ;;  %s1842_s4 = inlined_call_operand.vmem [shape: f32[4,3,24], index: 4, kind: input, shape index: {}]   ;;  %s1843_s5 = inlined_call_operand.vmem [shape: f32[1,3,24], index: 5, kind: input, shape index: {}]   ;;  %s1844_s6 = inlined_call_operand.vmem [shape: f32[4,4,128], index: 6, kind: input, shape index: {}]   ;;  %s1845_s7 = inlined_call_operand.vmem [shape: f32[1,1,128], index: 7, kind: input, shape index: {}]   ;;  %s1846_s8 = inlined_call_operand.hbm [shape: f32[4,8,8], index: 8, kind: output, shape index: {0}]   ;;  %s1847_s9 = inlined_call_operand.hbm [shape: f32[4,8,24], index: 9, kind: output, shape index: {1}]   ;;  %s1848_s10 = inlined_call_operand.hbm [shape: f32[4,8,128], index: 10, kind: output, shape index: {2}]  }
   0x1   :  { %1853 = sst [smem:[#allocation10_spill]] %s1838_s0 }
   0x2   :  { %1854 = sst [smem:[#allocation11_spill]] %s1839_s1 }
   0x3   :  { %1855 = sst [smem:[#allocation12_spill]] %s1840_s2 }
   0x4   :  { %1856 = sst [smem:[#allocation13_spill]] %s1842_s4 }
   0x5   :  { %16 = vsyncpa [#allocation3], 0 }
   0x6   :  { %18 = vsyncpa [#allocation3 + $0x1], 0 }
   0x7   :  { %19 = vsyncpa [#allocation5], 0 }
   0x8   :  { %21 = vsyncpa [#allocation5 + $0x1], 0  ;;  %s1483_s13 = smov 0   ;;  %s1485_s14 = smov 0  }
   0x9   :  { %s1487_s15 = smov 0   ;;  %s1489_s16 = smov 0  }
   0xa   :  { %s1491_s17 = smov 0   ;;  %s1493_s18 = smov 0  }
   0xb LB: > { %s1850_s19 = sadd.s32 4294967295, %s1413_s18   ;;  %s1849_s20 = sadd.s32 4294967294, %s1413_s18   ;;  %s1413_s18 = sphi %s1493_s18, %s27_s18   ;;  %s1409_s17 = sphi %s1491_s17, %s1878_s17   ;;  %s1405_s16 = sphi %s1489_s16, %s1877_s16   ;;  %s1401_s15 = sphi %s1487_s15, %s1876_s15   ;;  %s1397_s14 = sphi %s1485_s14, %s1875_s14   ;;  %s1393_s13 = sphi %s1483_s13, %s1874_s13  }
   0xc   : > { %s39_s21 = sadd.s32 1, %s1409_s17  ;;  %s250_s22 = sadd.s32 1, %s1401_s15 }
   0xd   : > { %p41_p0 = scmp.ge.s32.totalorder %s39_s21, 4  ;;  %p260_p1 = scmp.ne.s32.totalorder %s1401_s15, %s1397_s14 }
   0xe   : > { %p261_p2 = scmp.eq.s32.totalorder %s1850_s19, 3  ;;  %p266_p3 = scmp.ne.s32.totalorder %s1397_s14, %s1393_s13 }
   0xf   : > { %s1880_s21 = smov (%p41_p0, %s39_s21), 0  ;;  %p267_p5 = scmp.eq.s32.totalorder %s1849_s20, 3 }
  0x10   : > { %1857 = sst [smem:[#allocation9_spill]] %s1880_s21  ;;  %p1525_p4 = por %p261_p2, %p260_p1 }
  0x11   : > { %s245_s24 = ssub.s32 %s1409_s17, %s1880_s21  ;;  %p1133_p6 = scmp.ge.s32.totalorder %s1413_s18, 1 }
  0x12   : > { %p248_p7 = scmp.eq.s32.totalorder %s245_s24, 0  ;;  %p1534_p8 = por %p267_p5, %p266_p3 }
  0x13   : > { %p394_p9 = scmp.lt.s32.totalorder %s1413_s18, 5 }
  0x14   : > { %s1540_s26 = scalar_select %p248_p7, %s1401_s15, %s250_s22  }
  0x15   : > { %p395_p10 = pnand %p1133_p6, %p394_p9 }
  0x16   : > { %p466_p11 = scmp.lt.s32.totalorder (!%p395_p10), %s1405_s16, 3  ;;  %s1860_s0 = sld [smem:[#allocation10_spill]] (!%p395_p10) }
  0x17   : > { %398 = sbr.rel (%p395_p10) target bundleno = 330 (0x14a), region = 52  ;;  %s1861_s1 = sld [smem:[#allocation11_spill]] (!%p395_p10) }
  0x18   : > { %s1862_s2 = sld [smem:[#allocation12_spill]] (!%p395_p10)  ;;  %s1852_s30 = sand.u32 (!%p395_p10), 1, %s1397_s14  }
  0x19   : > { %s1863_s4 = sld [smem:[#allocation13_spill]] (!%p395_p10)  ;;  %s1864_s12 = sadd.s32 (!%p395_p10), 4294967295, %s1413_s18  }
  0x1c   : > { %v1415_v0 = vmov 0   ;;  %v1416_v1 = vmov 2   ;;  %s1544_s27 = scalar_select %p466_p11, %s1405_s16, 3  ;;  %v1417_v4 = vmov 1   ;;  %v1155_v53 = vld [vmem:[%s1843_s5 + $0x1] ss:$0 sm:$0xff] }
  0x1d   : > { %1258 = vset.pattern.permute.xlu0 %v1415_v0  ;;  %1260 = vset.pattern.permute.xlu1 %v1416_v1  ;;  %v1154_v57 = vld [vmem:[%s1843_s5] ss:$0 sm:$0xff]  ;;  %v1156_v61 = vld [vmem:[%s1843_s5 + $0x2] ss:$0 sm:$0xff]  ;;  %vm719_vm12 = vcmask 195584  }
  0x1e   : > { %s1137_s28 = sshll.u32 %s1544_s27, 3  ;;  %s1139_s20 = sshll.u32 %s1544_s27, 2 }
  0x1f   : > { %s472_s11 = scalar_lea.vmem %s1860_s0, %s1137_s28  ;;  %s479_s24 = scalar_lea.vmem %s1861_s1, %s1137_s28 }
  0x20   : > { %v495_v2 = vld [vmem:[%s472_s11] sm:$0xff]  ;;  %s483_s29 = scalar_lea.vmem %s1862_s2, %s1139_s20  ;;  %s490_s0 = scalar_lea.vmem %s1863_s4, %s1139_s20 }
  0x21   : > { %500 = vperm.xlu0 %1258, %v495_v2   ;;  %520 = vperm.xlu1 %1260, %v495_v2   ;;  %v496_v3 = vld [vmem:[%s479_s24] sm:$0xff]  ;;  %s1563_s22 = scalar_lea.vmem %s1844_s6, %s1139_s20  ;;  %s1629_s11 = sshll.u32 %s1852_s30, 3 }
  0x22   : > { %v1142_v5 = vld [vmem:[%s483_s29] ss:$0 sm:$0xff]  ;;  %v1144_v9 = vld [vmem:[%s483_s29 + $0x2] ss:$0 sm:$0xff]  ;;  %v1143_v16 = vld [vmem:[%s483_s29 + $0x1] ss:$0 sm:$0xff] }
  0x23   : > { %v1151_v6 = vld [vmem:[%s490_s0] ss:$0 sm:$0xff]  ;;  %v1153_v10 = vld [vmem:[%s490_s0 + $0x2] ss:$0 sm:$0xff]  ;;  %v1152_v17 = vld [vmem:[%s490_s0 + $0x1] ss:$0 sm:$0xff] }
  0x24   : > { %v1157_v7 = vld [vmem:[%s1563_s22] ss:$0 sm:$0xff]  ;;  %v1159_v12 = vld [vmem:[%s1563_s22 + $0x2] ss:$0 sm:$0xff]  ;;  %v1158_v18 = vld [vmem:[%s1563_s22 + $0x1] ss:$0 sm:$0xff] }
  0x25   : > { %1259 = vset.pattern.permute.xlu0 %v1417_v4  ;;  %1261 = vset.pattern.permute.xlu1 %v1415_v0  ;;  %s1637_s28 = sand.u32 1, %s1864_s12   ;;  %s1642_s0 = sshll.u32 %s1405_s16, 7 }
  0x26   : > { %510 = vperm.xlu0 %1259, %v495_v2   ;;  %653 = vperm.xlu1 %1261, %v496_v3   ;;  %s458_s19 = scalar_lea.vmem [#allocation4], %s1629_s11  ;;  %s1655_s24 = scalar_lea.hbm %s1847_s9, %s1642_s0 }
  0x27   : > { %s921_s20 = sshll.u32 %s458_s19, 4  ;;  %s1424_s16 = smov [#allocation4]   ;;  %s1657_s20 = int_to_ptr.vmem [resolvable:$true] %s921_s20 }
  0x28   : > { %s1281_s12 = scalar_lea.vmem %s1657_s20, 128  ;;  %s1285_s21 = sshll.u32 %s1424_s16, 4  ;;  %s1286_s21 = int_to_ptr.vmem [resolvable:$false] %s1285_s21 }
  0x29   : > { %p1282_p12 = scmp.ne.s32.totalorder %s1657_s20, %s1281_s12  ;;  %s1287_s30 = scalar_lea.vmem %s1286_s21, 256 }
  0x2a   : > { %1262 = vset.pattern.permute.xlu0 %v1415_v0  ;;  %p1288_p1 = scmp.lt.s32.totalorder %s1657_s20, %s1286_s21  ;;  %p1289_p2 = scmp.lt.s32.totalorder %s1287_s30, %s1281_s12 }
  0x2b   : > { %p1283_p13 = pnand %p1282_p12, %p1525_p4 }
  0x2c   : > { %p1290_p3 = por %p1289_p2, %p1288_p1 }
  0x2d   : > { %p1284_p0 = pneg %p1283_p13 }
  0x2f   : > { %p1291_p5 = pnand %p1290_p3, %p1284_p0 }
  0x9c   : > { %v501_v8 = vpop.permute.xlu0 %500  ;;  %v521_v11 = vpop.permute.xlu1 %520 }
  0x9d   : > { %v507_v13 = vsub.f32 %v501_v8, %v1142_v5  ;;  %v671_v14 = vsub.f32 %v501_v8, %v1151_v6  ;;  %v726_v15 = vsub.f32 %v501_v8, %v1157_v7  ;;  %v527_v19 = vsub.f32 %v521_v11, %v1144_v9 }
  0x9e   : > { %v683_v20 = vsub.f32 %v521_v11, %v1153_v10  ;;  %v738_v21 = vsub.f32 %v521_v11, %v1159_v12 }
  0x9f   : > { %v528_v23 = vmul.f32 %v507_v13, %v507_v13  ;;  %v684_v27 = vmul.f32 %v671_v14, %v671_v14  ;;  %v739_v28 = vmul.f32 %v726_v15, %v726_v15  ;;  %v531_v29 = vmul.f32 %v527_v19, %v527_v19 }
  0xa0   : > { %v687_v30 = vmul.f32 %v683_v20, %v683_v20  ;;  %v742_v34 = vmul.f32 %v738_v21, %v738_v21  ;;  %v701_v3 = vmul.f32 %v1154_v57, %v671_v14  ;;  %v714_v8 = vmul.f32 %v1156_v61, %v683_v20 }
  0xa1   : > { %v511_v22 = vpop.permute.xlu0 %510  ;;  %v1418_v20 = vmov 683565275  }
  0xa2   : > { %v517_v24 = vsub.f32 %v511_v22, %v1143_v16  ;;  %v677_v25 = vsub.f32 %v511_v22, %v1152_v17  ;;  %v732_v26 = vsub.f32 %v511_v22, %v1158_v18 }
  0xa4   : > { %v529_v31 = vmul.f32 %v517_v24, %v517_v24  ;;  %v685_v32 = vmul.f32 %v677_v25, %v677_v25  ;;  %v740_v33 = vmul.f32 %v732_v26, %v732_v26  ;;  %v707_v60 = vmul.f32 %v1155_v53, %v677_v25 }
  0xa5   : > { %v1419_v24 = vmov 2475754826   ;;  %v1420_v26 = vmov 2131351028  }
  0xa6   : > { %v530_v35 = vadd.f32 %v529_v31, %v528_v23  ;;  %v686_v36 = vadd.f32 %v685_v32, %v684_v27  ;;  %v741_v37 = vadd.f32 %v740_v33, %v739_v28  ;;  %v708_v7 = vadd.f32 %v707_v60, %v701_v3 }
  0xa7   : > { %v1421_v28 = vmov 2102212464  }
  0xa8   : > { %v532_v38 = vadd.f32 %v531_v29, %v530_v35  ;;  %v688_v39 = vadd.f32 %v687_v30, %v686_v36  ;;  %v743_v40 = vadd.f32 %v742_v34, %v741_v37  ;;  %v1595_v19 = vadd.f32 %v714_v8, %v708_v7 }
  0xa9   : > { %v1422_v30 = vmov 920167782   ;;  %v1423_v37 = vmov 1326507024  }
  0xaa   : > { %1263 = vrsqrt.f32 %v532_v38  ;;  %vm535_vm0 = vcmp.eq.f32.partialorder %v532_v38, inf  ;;  %v538_v45 = vand.u32 2147483648, %v532_v38  ;;  %vm537_vm1 = vcmp.eq.f32.partialorder %v532_v38, 0.0 }
  0xab   : > { %1265 = vrsqrt.f32 %v688_v39  ;;  %vm746_vm2 = vcmp.eq.f32.partialorder %v743_v40, inf  ;;  %v749_v50 = vand.u32 2147483648, %v743_v40  ;;  %vm748_vm3 = vcmp.eq.f32.partialorder %v743_v40, 0.0 }
  0xac   : > { %1267 = vrsqrt.f32 %v743_v40  ;;  %vm691_vm4 = vcmp.eq.f32.partialorder %v688_v39, inf  ;;  %v694_v62 = vand.u32 2147483648, %v688_v39  ;;  %vm693_vm5 = vcmp.eq.f32.partialorder %v688_v39, 0.0 }
  0xb7   : > { %v1264_v41 = vpop.eup %1263 }
  0xb8   : > { %v1266_v42 = vpop.eup %1265  ;;  %v534_v43 = vmul.f32 %v1264_v41, %v532_v38 }
  0xb9   : > { %v1268_v44 = vpop.eup %1267  ;;  %v690_v48 = vmul.f32 %v1266_v42, %v688_v39 }
  0xba   : > { %v536_v46 = vsel %vm535_vm0, %v532_v38, %v534_v43  ;;  %v745_v47 = vmul.f32 %v1268_v44, %v743_v40 }
  0xbb   : > { %v1568_v49 = vsel %vm537_vm1, %v538_v45, %v536_v46  ;;  %v692_v59 = vsel %vm691_vm4, %v688_v39, %v690_v48 }
  0xbc   : > { %v1571_v51 = vmul.f32 0.62831855, %v1568_v49  ;;  %v747_v52 = vsel %vm746_vm2, %v743_v40, %v745_v47  ;;  %v695_v5 = vsel %vm693_vm5, %v694_v62, %v692_v59 }
  0xbd   : > { %v1576_v54 = vsel %vm748_vm3, %v749_v50, %v747_v52  ;;  %v716_v13 = vadd.f32 1e-06, %v695_v5 }
  0xbe   : > { %v541_v55 = vand.u32 2147483647, %v1571_v51  ;;  %v544_v56 = vand.u32 2139095040, %v1571_v51  ;;  %v1584_v58 = vmul.f32 0.62831855, %v1576_v54 }
  0xbf   : > { %1269 = vrcp.f32 %v716_v13 }
  0xc0   : > { %v545_v63 = vshrl.u32 %v544_v56, 23  ;;  %v548_v0 = vand.u32 8388607, %v541_v55  ;;  %v752_v1 = vand.u32 2147483647, %v1584_v58  ;;  %v755_v2 = vand.u32 2139095040, %v1584_v58 }
  0xc2   : > { %v1145_v4 = vadd.s32 4294967169, %v545_v63  ;;  %v756_v6 = vshrl.u32 %v755_v2, 23  ;;  %v549_v10 = vor.u32 8388608, %v548_v0  ;;  %v759_v12 = vand.u32 8388607, %v752_v1 }
  0xc4   : > { %v551_v9 = vadd.s32 1, %v1145_v4  ;;  %v1160_v11 = vadd.s32 4294967169, %v756_v6  ;;  %v1597_v14 = vshll.u32 %v549_v10, 8  ;;  %v760_v21 = vor.u32 8388608, %v759_v12 }
  0xc6   : > { %vm552_vm6 = vcmp.gt.s32.totalorder %v551_v9, 0  ;;  %v762_v16 = vadd.s32 1, %v1160_v11  ;;  %v1609_v62 = vshll.u32 %v760_v21, 8 }
  0xc7   : > { %v553_v15 = vsel %vm552_vm6, %v551_v9, 0 }
  0xc8   : > { %v554_v17 = vshrl.u32 %v553_v15, 5  ;;  %v555_v18 = vand.u32 31, %v553_v15  ;;  %vm763_vm7 = vcmp.gt.s32.totalorder %v762_v16, 0 }
  0xc9   : > { %v764_v42 = vsel %vm763_vm7, %v762_v16, 0 }
  0xca   : > { %v556_v22 = vsub.s32 32, %v555_v18  ;;  %v558_v23 = vshll.u32 %v1418_v20, %v555_v18  ;;  %v561_v25 = vshll.u32 %v1419_v24, %v555_v18  ;;  %v564_v27 = vshll.u32 %v1420_v26, %v555_v18 }
  0xcb   : > { %v567_v29 = vshll.u32 %v1421_v28, %v555_v18  ;;  %v570_v31 = vshll.u32 %v1422_v30, %v555_v18  ;;  %vm573_vm8 = vcmp.lt.s32.totalorder %v554_v17, 1  ;;  %vm574_vm9 = vcmp.lt.s32.totalorder %v554_v17, 2 }
  0xcc   : > { %v559_v32 = vshrl.u32 %v1419_v24, %v556_v22  ;;  %v562_v33 = vshrl.u32 %v1420_v26, %v556_v22  ;;  %v565_v34 = vshrl.u32 %v1421_v28, %v556_v22  ;;  %v557_v35 = vshrl.u32 %v1418_v20, %v556_v22  ;;  %v1270_v12 = vpop.eup %1269 }
  0xcd   : > { %v568_v36 = vshrl.u32 %v1422_v30, %v556_v22  ;;  %v571_v38 = vshrl.u32 %v1423_v37, %v556_v22  ;;  %vm575_vm10 = vcmp.lt.s32.totalorder %v554_v17, 3  ;;  %vm576_vm11 = vcmp.lt.s32.totalorder %v554_v17, 4 }
  0xce   : > { %v560_v39 = vor.u32 %v559_v32, %v558_v23  ;;  %v563_v40 = vor.u32 %v562_v33, %v561_v25  ;;  %v566_v41 = vor.u32 %v565_v34, %v564_v27  ;;  %v766_v45 = vand.u32 31, %v764_v42 }
  0xcf   : > { %v569_v43 = vor.u32 %v568_v36, %v567_v29  ;;  %v572_v44 = vor.u32 %v571_v38, %v570_v31  ;;  %v1614_v2 = vshrl.u32 %v764_v42, 5  ;;  %v718_v36 = vmul.f32 %v1270_v12, %v1595_v19 }
  0xd0   : > { %v577_v46 = vsel %vm573_vm8, %v557_v35, %v560_v39  ;;  %v578_v47 = vsel %vm576_vm11, %v566_v41, 2102212464  ;;  %v581_v48 = vsel %vm573_vm8, %v560_v39, %v563_v40  ;;  %v585_v50 = vsel %vm573_vm8, %v563_v40, %v566_v41 }
  0xd1   : > { %v579_v52 = vsel %vm575_vm10, %v563_v40, %v578_v47  ;;  %v582_v53 = vsel %vm576_vm11, %v569_v43, 920167782  ;;  %v586_v56 = vsel %vm576_vm11, %v572_v44, 1326507024  ;;  %v767_v57 = vsub.s32 32, %v766_v45  ;;  %720 = vst.msk [vmem:[%s458_s19] sm:$0xff] %vm719_vm12, %v718_v36 }
  0xd2   : > { %v580_v59 = vsel %vm574_vm9, %v577_v46, %v579_v52  ;;  %v583_v60 = vsel %vm575_vm10, %v566_v41, %v582_v53  ;;  %v587_v61 = vsel %vm575_vm10, %v569_v43, %v586_v56  ;;  %v769_v3 = vshll.u32 %v1418_v20, %v766_v45 }
  0xd3   : > { %v584_v63 = vsel %vm574_vm9, %v581_v48, %v583_v60  ;;  %v588_v0 = vsel %vm574_vm9, %v585_v50, %v587_v61  ;;  %v596_v8 = vmul.u32 %v1597_v14, %v580_v59  ;;  %v770_v9 = vshrl.u32 %v1419_v24, %v767_v57 }
  0xd4   : > { %v1618_v4 = vmul.u32.u64.low %v1597_v14, %v588_v0  ;;  %v1619_v5 = vmul.u32.u64.high %v1597_v14, %v588_v0, %v1618_v4  ;;  %v1622_v6 = vmul.u32.u64.low %v1597_v14, %v584_v63  ;;  %v1623_v7 = vmul.u32.u64.high %v1597_v14, %v584_v63, %v1622_v6 }
  0xd5   : > { %v772_v10 = vshll.u32 %v1419_v24, %v766_v45  ;;  %v773_v11 = vshrl.u32 %v1420_v26, %v767_v57  ;;  %v775_v13 = vshll.u32 %v1420_v26, %v766_v45  ;;  %v776_v15 = vshrl.u32 %v1421_v28, %v767_v57 }
  0xd6   : > { %v778_v16 = vshll.u32 %v1421_v28, %v766_v45  ;;  %v779_v17 = vshrl.u32 %v1422_v30, %v767_v57  ;;  %v771_v18 = vor.u32 %v770_v9, %v769_v3  ;;  %v781_v22 = vshll.u32 %v1422_v30, %v766_v45 }
  0xd7   : > { %v774_v21 = vor.u32 %v773_v11, %v772_v10  ;;  %v782_v23 = vshrl.u32 %v1423_v37, %v767_v57  ;;  %vm598_vm13 = vc.u32 %v1619_v5, %v1622_v6  ;;  %v599_v14 = vadd.s32 1, %v1623_v7 }
  0xd8   : > { %v768_v24 = vshrl.u32 %v1418_v20, %v767_v57  ;;  %v777_v25 = vor.u32 %v776_v15, %v775_v13  ;;  %v780_v26 = vor.u32 %v779_v17, %v778_v16  ;;  %vm784_vm14 = vcmp.lt.s32.totalorder %v1614_v2, 1 }
  0xd9   : > { %v783_v27 = vor.u32 %v782_v23, %v781_v22  ;;  %vm785_vm15 = vcmp.lt.s32.totalorder %v1614_v2, 2  ;;  %v600_v28 = vsel %vm598_vm13, %v599_v14, %v1623_v7  ;;  %vm786_vm0 = vcmp.lt.s32.totalorder %v1614_v2, 3 }
  0xda   : > { %vm787_vm1 = vcmp.lt.s32.totalorder %v1614_v2, 4  ;;  %v792_v20 = vsel %vm784_vm14, %v771_v18, %v774_v21  ;;  %v601_v29 = vadd.s32 %v600_v28, %v596_v8  ;;  %v796_v32 = vsel %vm784_vm14, %v774_v21, %v777_v25 }
  0xdb   : > { %v789_v30 = vsel %vm787_vm1, %v777_v25, 2102212464  ;;  %v793_v31 = vsel %vm787_vm1, %v780_v26, 920167782  ;;  %v788_v33 = vsel %vm784_vm14, %v768_v24, %v771_v18  ;;  %v797_v35 = vsel %vm787_vm1, %v783_v27, 1326507024 }
  0xdc   : > { %v794_v34 = vsel %vm786_vm0, %v777_v25, %v793_v31  ;;  %v602_v37 = vadd.s32 536870912, %v601_v29  ;;  %v790_v38 = vsel %vm786_vm0, %v774_v21, %v789_v30  ;;  %v798_v19 = vsel %vm786_vm0, %v780_v26, %v797_v35 }
  0xdd   : > { %v795_v39 = vsel %vm785_vm15, %v792_v20, %v794_v34  ;;  %v799_v40 = vsel %vm785_vm15, %v796_v32, %v798_v19 }
  0xde   : > { %v1668_v41 = vmul.u32.u64.low %v1609_v62, %v795_v39  ;;  %v1669_v42 = vmul.u32.u64.high %v1609_v62, %v795_v39, %v1668_v41  ;;  %v1673_v43 = vshrl.u32 %v602_v37, 30 }
  0xdf   : > { %v1676_v44 = vmul.u32.u64.low %v1609_v62, %v799_v40  ;;  %v1677_v45 = vmul.u32.u64.high %v1609_v62, %v799_v40, %v1676_v44 }
  0xe0   : > { %1294 = shalt.err (!%p1291_p5)
}
  0xe1   : > { %s1295_s19 = scalar_lea.hbm %s1655_s24, 128  ;;  %s1299_s16 = scalar_lea.hbm %s1847_s9, 512 }
  0xe2   : > { %p1296_p6 = scmp.ne.s32.totalorder %s1655_s24, %s1295_s19  ;;  %p1300_p10 = scmp.lt.s32.totalorder %s1655_s24, %s1847_s9 }
  0xe3   : > { %p1301_p11 = scmp.lt.s32.totalorder %s1299_s16, %s1295_s19 }
  0xe4   : > { %p1297_p7 = pnand %p1296_p6, %p1525_p4 }
  0xe5   : > { %p1302_p12 = por %p1301_p11, %p1300_p10 }
  0xe6   : > { %p1298_p9 = pneg %p1297_p7 }
  0xe8   : > { %p1303_p13 = pnand %p1302_p12, %p1298_p9 }
  0xea   : > { %1306 = shalt.err (!%p1303_p13)
}
  0xeb   : > { %s1865_s30 = scalar_lea.sflag [#allocation5], %s1637_s28  ;;  %v791_v46 = vsel %vm785_vm15, %v788_v33, %v790_v38  ;;  %v604_v47 = vshll.u32 %v1673_v43, 30  ;;  %v810_v48 = vadd.s32 1, %v1669_v42  ;;  %vm809_vm2 = vc.u32 %v1677_v45, %v1668_v41  ;;  %v1166_v39 = vld [vmem:[%s1845_s7] ss:$0 sm:$0xff]  ;;  %s1764_s19 = scalar_lea.hbm %s1846_s8, %s1642_s0 }
  0xec   : > { %1184 = dma.vmem_to_hbm [thread:$0]  (%p1525_p4), %s1657_s20, 128, %s1655_s24, %s1865_s30   ;;  %v807_v52 = vmul.u32 %v1609_v62, %v791_v46  ;;  %v597_v62 = vadd.s32 %v1622_v6, %v1619_v5  ;;  %v808_v5 = vadd.s32 %v1668_v41, %v1677_v45  ;;  %vm543_vm5 = vcmp.lt.s32.totalorder %v1571_v51, 0 }
  0xed   : > { %v605_v50 = vsub.s32 %v601_v29, %v604_v47  ;;  %v811_v53 = vsel %vm809_vm2, %v810_v48, %v1669_v42  ;;  %vm1720_vm6 = vcmp.le.f32.partialorder %v541_v55, 0.7853982  ;;  %v627_v34 = vsub.s32 4, %v1673_v43  ;;  %s486_s24 = scalar_lea.vmem %s1841_s3, %s1544_s27  ;;  %s451_s27 = scalar_lea.vmem [#allocation2], %s1629_s11 }
  0xee   : > { %v812_v57 = vadd.s32 %v811_v53, %v807_v52  ;;  %vm754_vm7 = vcmp.lt.s32.totalorder %v1584_v58, 0  ;;  %vm1737_vm8 = vcmp.le.f32.partialorder %v752_v1, 0.7853982  ;;  %vm633_vm12 = vweird.f32 %v1571_v51  ;;  %s907_s29 = sshll.u32 %s451_s27, 4  ;;  %s1870_s16 = sand.u32 1, %s1397_s14   ;;  %s1766_s29 = int_to_ptr.vmem [resolvable:$true] %s907_s29 }
  0xef   : > { %v607_v56 = vsub.s32 0, %v605_v50  ;;  %v628_v38 = vsel %vm543_vm5, %v627_v34, %v1673_v43  ;;  %v875_v43 = vsub.f32 %v1576_v54, %v1166_v39  ;;  %vm646_vm13 = vcmp.lt.f32.partialorder %v1568_v49, 5.0  ;;  %s883_s30 = scalar_lea.sflag [#allocation3], %s1870_s16  ;;  %s1307_s1 = scalar_lea.vmem %s1766_s29, 128 }
  0xf0   : > { %v813_v60 = vadd.s32 536870912, %v812_v57  ;;  %v630_v40 = vsel %vm1720_vm6, 0, %v628_v38  ;;  %vm664_vm14 = vcmask 64512   ;;  %vm844_vm2 = vweird.f32 %v1584_v58  ;;  %p1308_p0 = scmp.ne.s32.totalorder %s1766_s29, %s1307_s1  ;;  %s1426_s2 = smov [#allocation2]  }
  0xf1   : > { %v1146_v59 = vmin.u32 %v607_v56, %v605_v50  ;;  %v634_v45 = vand.u32 3, %v630_v40  ;;  %v876_v48 = vmul.f32 %v875_v43, %v875_v43  ;;  %s1311_s4 = sshll.u32 %s1426_s2, 4  ;;  %s1312_s4 = int_to_ptr.vmem [resolvable:$false] %s1311_s4 }
  0xf2   : > { %v1710_v63 = vshrl.u32 %v813_v60, 30  ;;  %p1309_p1 = pnand %p1308_p0, %p1525_p4  ;;  %s1313_s20 = scalar_lea.vmem %s1312_s4, 256 }
  0xf3   : > { %v609_v61 = vclz %v1146_v59  ;;  %vm639_vm9 = vcmp.eq.s32.totalorder %v634_v45, 2  ;;  %vm636_vm10 = vcmp.eq.s32.totalorder %v634_v45, 0  ;;  %vm635_vm11 = vcmp.lt.s32.totalorder %v634_v45, 2  ;;  %p1314_p3 = scmp.lt.s32.totalorder %s1766_s29, %s1312_s4  ;;  %p1315_p5 = scmp.lt.s32.totalorder %s1313_s20, %s1307_s1 }
  0xf4   : > { %v815_v2 = vshll.u32 %v1710_v63, 30  ;;  %v838_v46 = vsub.s32 4, %v1710_v63  ;;  %v877_v59 = vmul.f32 -4.5, %v876_v48  ;;  %p1310_p2 = pneg %p1309_p1 }
  0xf5   : > { %v1147_v0 = vadd.s32 4294967294, %v609_v61  ;;  %v1150_v61 = vld [vmem:[%s486_s24] ss:$0 sm:$0xff]  ;;  %p1316_p6 = por %p1315_p5, %p1314_p3 }
  0xf6   : > { %v816_v4 = vsub.s32 %v812_v57, %v815_v2  ;;  %v839_v56 = vsel %vm754_vm7, %v838_v46, %v1710_v63 }
  0xf7   : > { %vm1148_vm3 = vcmp.lt.s32.totalorder %v1147_v0, 0  ;;  %p1317_p7 = pnand %p1316_p6, %p1310_p2 }
  0xf8   : > { %v612_v3 = vsel %vm1148_vm3, 0, %v1147_v0  ;;  %v818_v9 = vsub.s32 0, %v816_v4  ;;  %v654_v0 = vpop.permute.xlu1 %653 }
  0xf9   : > { %v613_v7 = vsub.s32 32, %v612_v3  ;;  %v617_v8 = vsub.s32 4294967266, %v612_v3  ;;  %v614_v10 = vshll.u32 %v605_v50, %v612_v3  ;;  %v841_v3 = vsel %vm1737_vm8, 0, %v839_v56 }
  0xfa   : > { %v1161_v13 = vmin.u32 %v818_v9, %v816_v4  ;;  %v662_v63 = vmul.f32 %v1150_v61, %v654_v0  ;;  %v1425_v9 = vmov 0.0  }
  0xfb   : > { %v615_v11 = vshrl.u32 %v597_v62, %v613_v7  ;;  %v618_v12 = vadd.s32 127, %v617_v8  ;;  %v878_v62 = vmul.f32 1.442695, %v877_v59  ;;  %v845_v8 = vand.u32 3, %v841_v3 }
  0xfc   : > { %v820_v17 = vclz %v1161_v13 }
  0xfd   : > { %v616_v15 = vor.u32 %v615_v11, %v614_v10  ;;  %v619_v16 = vshll.u32 %v618_v12, 23  ;;  %v1149_v10 = vsel %vm646_vm13, 1.0, %v1425_v9  ;;  %vm850_vm15 = vcmp.eq.s32.totalorder %v845_v8, 2 }
  0xfe   : > { %v1162_v21 = vadd.s32 4294967294, %v820_v17  ;;  %vm847_vm0 = vcmp.eq.s32.totalorder %v845_v8, 0  ;;  %vm846_vm1 = vcmp.lt.s32.totalorder %v845_v8, 2 }
  0xff   : > { %v620_v18 = vor.u32 4788187, %v619_v16  ;;  %v623_v23 = vcvt.s32.f32 %v616_v15 }
 0x100   : > { %vm1163_vm4 = vcmp.lt.s32.totalorder %v1162_v21, 0 }
 0x101   : > { %v621_v22 = vand.u32 2147483647, %v620_v18  ;;  %v823_v24 = vsel %vm1163_vm4, 0, %v1162_v21 }
 0x102   : > { %v824_v6 = vsub.s32 32, %v823_v24  ;;  %v828_v25 = vsub.s32 4294967266, %v823_v24  ;;  %v825_v27 = vshll.u32 %v816_v4, %v823_v24 }
 0x103   : > { %v624_v14 = vmul.f32 %v623_v23, %v621_v22 }
 0x104   : > { %v826_v28 = vshrl.u32 %v808_v5, %v824_v6  ;;  %v829_v20 = vadd.s32 127, %v828_v25 }
 0x105   : > { %v625_v26 = vxor.u32 2147483648, %v624_v14 }
 0x106   : > { %v827_v32 = vor.u32 %v826_v28, %v825_v27  ;;  %v830_v33 = vshll.u32 %v829_v20, 23 }
 0x107   : > { %v626_v30 = vsel %vm543_vm5, %v625_v26, %v624_v14 }
 0x108   : > { %v629_v31 = vsel %vm1720_vm6, %v1571_v51, %v626_v30  ;;  %v831_v35 = vor.u32 4788187, %v830_v33  ;;  %v834_v37 = vcvt.s32.f32 %v827_v32 }
 0x109   : > { %1271 = vcosq.f32 %v629_v31 }
 0x10a   : > { %1273 = vsinq.f32 %v629_v31  ;;  %v832_v36 = vand.u32 2147483647, %v831_v35 }
 0x10c   : > { %v835_v55 = vmul.f32 %v834_v37, %v832_v36 }
 0x10e   : > { %v836_v19 = vxor.u32 2147483648, %v835_v55 }
 0x110   : > { %v837_v42 = vsel %vm754_vm7, %v836_v19, %v835_v55 }
 0x111   : > { %v840_v44 = vsel %vm1737_vm8, %v1584_v58, %v837_v42 }
 0x112   : > { %1275 = vcosq.f32 %v840_v44 }
 0x113   : > { %1277 = vsinq.f32 %v840_v44 }
 0x114   : > { %1279 = vpow2.f32 %v878_v62 }
 0x116   : > { %v1272_v47 = vpop.eup %1271 }
 0x117   : > { %v1274_v1 = vpop.eup %1273  ;;  %v640_v50 = vxor.u32 2147483648, %v1272_v47 }
 0x118   : > { %v637_v52 = vxor.u32 2147483648, %v1274_v1 }
 0x119   : > { %v641_v53 = vsel %vm639_vm9, %v640_v50, %v1274_v1 }
 0x11a   : > { %v638_v57 = vsel %vm636_vm10, %v1272_v47, %v637_v52 }
 0x11b   : > { %v642_v60 = vsel %vm635_vm11, %v638_v57, %v641_v53 }
 0x11c   : > { %v643_v2 = vsel %vm633_vm12, nan, %v642_v60 }
 0x11d   : > { %v644_v4 = vadd.f32 1.0, %v643_v2 }
 0x11f   : > { %v645_v7 = vmul.f32 0.5, %v644_v4  ;;  %v1276_v51 = vpop.eup %1275 }
 0x120   : > { %v1278_v12 = vpop.eup %1277  ;;  %v851_v13 = vxor.u32 2147483648, %v1276_v51 }
 0x121   : > { %v649_v11 = vmul.f32 %v1149_v10, %v645_v7  ;;  %v848_v16 = vxor.u32 2147483648, %v1278_v12 }
 0x122   : > { %v852_v49 = vsel %vm850_vm15, %v851_v13, %v1278_v12 }
 0x123   : > { %v663_v15 = vmul.f32 %v662_v63, %v649_v11  ;;  %v849_v17 = vsel %vm847_vm0, %v1276_v51, %v848_v16 }
 0x124   : > { %v853_v18 = vsel %vm846_vm1, %v849_v17, %v852_v49 }
 0x125   : > { %665 = vst.msk [vmem:[%s451_s27] sm:$0xff] %vm664_vm14, %v663_v15 }
 0x126   : > { %1320 = shalt.err (!%p1317_p7)
}
 0x127   : > { %s1321_s24 = scalar_lea.hbm %s1764_s19, 128  ;;  %s1325_s21 = scalar_lea.hbm %s1846_s8, 512 }
 0x128   : > { %p1322_p9 = scmp.ne.s32.totalorder %s1764_s19, %s1321_s24  ;;  %p1326_p12 = scmp.lt.s32.totalorder %s1764_s19, %s1846_s8 }
 0x129   : > { %p1327_p13 = scmp.lt.s32.totalorder %s1325_s21, %s1321_s24 }
 0x12a   : > { %p1323_p10 = pnand %p1322_p9, %p1525_p4 }
 0x12b   : > { %p1328_p0 = por %p1327_p13, %p1326_p12 }
 0x12c   : > { %p1324_p11 = pneg %p1323_p10 }
 0x12e   : > { %p1329_p1 = pnand %p1328_p0, %p1324_p11 }
 0x130   : > { %1332 = shalt.err (!%p1329_p1)
}
 0x131   : > { %1183 = dma.vmem_to_hbm [thread:$0]  (%p1525_p4), %s1766_s29, 128, %s1764_s19, %s883_s30   ;;  %v1165_v21 = vld [vmem:[%s1563_s22 + $0x3] ss:$0 sm:$0xff]  ;;  %v854_v22 = vsel %vm844_vm2, nan, %v853_v18  ;;  %vm857_vm3 = vcmp.lt.f32.partialorder %v1576_v54, 5.0  ;;  %v1280_v26 = vpop.eup %1279 }
 0x132   : > { %v855_v23 = vadd.f32 1.0, %v854_v22  ;;  %v866_v24 = vmul.f32 %v1165_v21, %v654_v0  ;;  %v1164_v5 = vsel %vm857_vm3, 1.0, %v1425_v9  ;;  %s465_s1 = scalar_lea.vmem [#allocation6], %s1629_s11  ;;  %s933_s22 = scalar_lea.hbm %s1848_s10, %s1642_s0 }
 0x133   : > { %s935_s4 = sshll.u32 %s465_s1, 4  ;;  %s1427_s19 = smov [#allocation6]   ;;  %s936_s4 = int_to_ptr.vmem [resolvable:$true] %s935_s4 }
 0x134   : > { %v856_v14 = vmul.f32 0.5, %v855_v23  ;;  %s1333_s29 = scalar_lea.vmem %s936_s4, 128  ;;  %s1337_s30 = sshll.u32 %s1427_s19, 4  ;;  %s1338_s30 = int_to_ptr.vmem [resolvable:$false] %s1337_s30 }
 0x135   : > { %p1334_p2 = scmp.ne.s32.totalorder %s936_s4, %s1333_s29  ;;  %s1339_s27 = scalar_lea.vmem %s1338_s30, 256 }
 0x136   : > { %v860_v6 = vmul.f32 %v1164_v5, %v856_v14  ;;  %p1340_p6 = scmp.lt.s32.totalorder %s936_s4, %s1338_s30  ;;  %p1341_p7 = scmp.lt.s32.totalorder %s1339_s27, %s1333_s29 }
 0x137   : > { %p1335_p3 = pnand %p1334_p2, %p1525_p4 }
 0x138   : > { %v867_v25 = vmul.f32 %v866_v24, %v860_v6  ;;  %p1342_p9 = por %p1341_p7, %p1340_p6 }
 0x139   : > { %p1336_p5 = pneg %p1335_p3 }
 0x13a   : > { %v880_v27 = vmul.f32 %v1280_v26, %v867_v25 }
 0x13b   : > { %p1343_p10 = pnand %p1342_p9, %p1336_p5 }
 0x13c   : > { %881 = vst [vmem:[%s465_s1] sm:$0xff] %v880_v27 }
 0x13d   : > { %1346 = shalt.err (!%p1343_p10)
}
 0x13e   : > { %s1347_s11 = scalar_lea.hbm %s933_s22, 128  ;;  %s1351_s21 = scalar_lea.hbm %s1848_s10, 512 }
 0x13f   : > { %p1348_p11 = scmp.ne.s32.totalorder %s933_s22, %s1347_s11  ;;  %p1352_p0 = scmp.lt.s32.totalorder %s933_s22, %s1848_s10 }
 0x140   : > { %p1353_p1 = scmp.lt.s32.totalorder %s1351_s21, %s1347_s11 }
 0x141   : > { %p1349_p12 = pnand %p1348_p11, %p1525_p4 }
 0x142   : > { %p1354_p2 = por %p1353_p1, %p1352_p0 }
 0x143   : > { %p1350_p13 = pneg %p1349_p12 }
 0x145   : > { %p1355_p3 = pnand %p1354_p2, %p1350_p13 }
 0x147   : > { %1358 = shalt.err (!%p1355_p3)
}
 0x148   : > { %s1871_s1 = scalar_lea.sflag [#allocation5], %s1637_s28 }
 0x149   : > { %1185 = dma.vmem_to_hbm [thread:$0]  (%p1525_p4), %s936_s4, 128, %s933_s22, %s1871_s1  }
 0x14a PF: > { %p1199_p5 = scmp.ge.s32.totalorder %s1413_s18, 2  ;;  %s947_s20 = sand.u32 1, %s1393_s13  }
 0x14b   : > { %s948_s24 = scalar_lea.sflag [#allocation3], %s947_s20 }
 0x14c   : > { %p1190_p6 = pnand %p1199_p5, %p1534_p8 }
 0x14e   : > { %p1191_p7 = pneg %p1190_p6 }
 0x150   : > { %1384 = dma.done.wait (%p1191_p7), %s948_s24, 128  }
 0x151   : > { %1386 = vsyncadd (%p1191_p7), %s948_s24, 4294967168  ;;  %s1872_s29 = sadd.s32 4294967294, %s1413_s18  }
 0x152   : > { %s956_s19 = sand.u32 1, %s1872_s29  }
 0x153   : > { %s957_s30 = scalar_lea.sflag [#allocation5], %s956_s19 }
 0x154   : > { %1388 = dma.done.wait (%p1191_p7), %s957_s30, 256  }
 0x155   : > { %1390 = vsyncadd (%p1191_p7), %s957_s30, 4294967040  ;;  %s27_s18 = sadd.s32 1, %s1413_s18   ;;  %s1873_s23 = sld [smem:[#allocation9_spill]] }
 0x156   : > { %p24_p4 = scmp.ge.s32.totalorder %s27_s18, 6   ;;  %s1874_s13 = smov %s1397_s14 }
 0x157   : > { %s1875_s14 = smov %s1401_s15  ;;  %s1876_s15 = smov %s1540_s26 }
 0x158   : > { %s1877_s16 = smov %s1409_s17  ;;  %26 = sbr.rel (!%p24_p4) target bundleno = 11 (0xb), region = 134 }
 0x15b   : > { %s1878_s17 = smov %s1873_s23 }
 0x15d   :  { %971 = vsyncpa [#allocation3], 1 }
 0x15e   :  { %973 = vsyncpa [#allocation3 + $0x1], 1 }
 0x15f   :  { %974 = vsyncpa [#allocation5], 1 }
 0x160   :  { %976 = vsyncpa [#allocation5 + $0x1], 1 }

</bundles_post_ra>
